<compile_context>
chip_gen: v6e
topology: v6e:2x2x1
jax: 0.10.0
libtpu: 0.0.40
codegen_flags: <defaults>
</compile_context>

<pallas_src>
import jax
import jax.numpy as jnp
from jax.experimental import pallas as pl
from jax.experimental.pallas import tpu as pltpu


def _res_block_kernel(x_ref, w1_ref, b1_ref, w2_ref, b2_ref, o_ref):
    # x_ref / o_ref: (Nb, C, T)
    # w1: (C_mid, C), b1: (C_mid, 1), w2: (C, C_mid), b2: (C, 1)
    w1 = w1_ref[...]
    b1 = b1_ref[...]
    w2 = w2_ref[...]
    b2 = b2_ref[...]
    hp = jax.lax.Precision.HIGHEST  # exact-enough f32; free since the op is HBM-bound

    # Static unroll over the (small, <=8) batch sub-block: each contraction stays a
    # clean 2-D (rows x lanes) matmul, no in-kernel transposes.
    for b in range(x_ref.shape[0]):
        x = x_ref[b]                                                 # (C, T), read once
        h = jnp.dot(w1, x, precision=hp, preferred_element_type=jnp.float32) + b1
        h = jnp.maximum(h, 0.0)
        y = jnp.dot(w2, h, precision=hp, preferred_element_type=jnp.float32) + b2
        o_ref[b] = jnp.maximum(y + x, 0.0).astype(o_ref.dtype)       # residual + ReLU


def _round_down_128(x):
    return (x // 128) * 128


def _choose_tiling(N, C, HW, *, tile_hw, max_block_bytes, max_batch_block):
    """Pick the block shape (Nb, C, tile) and return (Nb, tile)."""
    bytes_per_col = C * 4
    # Column cap derived from the per-block VMEM budget.
    col_cap = max(128, _round_down_128(max_block_bytes // bytes_per_col))
    tile_target = max(128, min(int(tile_hw), col_cap))

    if HW > tile_target:
        # Large feature maps: tile the spatial axis, one batch element per block.
        # Prefer a tile that divides HW (no ragged tail); otherwise keep the target
        # and let Pallas mask the ragged last tile (cdiv grid, no pad/slice copies).
        t = _round_down_128(tile_target)
        tile = t
        while t >= 128:
            if HW % t == 0:
                tile = t
                break
            t -= 128
        return 1, tile

    # Small feature maps: take the whole spatial extent and block over the batch so
    # each grid step is one large, fully HBM-contiguous DMA.
    per_item = C * HW * 4
    nb_cap = max(1, max_block_bytes // per_item)
    nb_cap = min(nb_cap, max_batch_block)        # bound the static unroll in the kernel
    if N >= 2:
        nb_cap = min(nb_cap, max(1, N // 2))     # keep >= 2 grid steps (v7x megacore)
    nb = 1
    for d in range(1, min(nb_cap, N) + 1):
        if N % d == 0:
            nb = d
    return nb, HW


def spectral_res_block_forward(x_nchw, w1, b1, w2, b2, *, tile_hw=32768,
                               max_block_bytes=2 << 20, max_batch_block=8):
    """Forward of spectral_res_block.

    x_nchw: (N, C, H, W) float32
    w1: (C_mid, C)   (PyTorch Conv2d weight (C_mid, C, 1, 1) squeezed), b1: (C_mid,)
    w2: (C, C_mid),  b2: (C,)
    """
    N, C, H, W = x_nchw.shape
    C_mid = w1.shape[0]
    assert w1.shape == (C_mid, C) and w2.shape == (C, C_mid)
    assert b1.shape == (C_mid,) and b2.shape == (C,)

    HW = H * W
    x3 = x_nchw.reshape(N, C, HW)  # free reshape, stays NCHW-contiguous

    Nb, tile = _choose_tiling(N, C, HW, tile_hw=tile_hw,
                              max_block_bytes=max_block_bytes,
                              max_batch_block=max_batch_block)
    grid = (N // Nb, pl.cdiv(HW, tile))

    # Biases as (rows, 1) so they broadcast over lanes inside the kernel.
    b1c = b1.reshape(C_mid, 1)
    b2c = b2.reshape(C, 1)

    elem_bytes = x_nchw.dtype.itemsize
    cost = pl.CostEstimate(
        flops=4 * N * HW * C * C_mid,          # two (C x C_mid) contractions per column
        transcendentals=0,
        bytes_accessed=2 * N * C * HW * elem_bytes
        + (int(w1.size) + int(w2.size) + int(b1.size) + int(b2.size)) * 4,
    )

    out = pl.pallas_call(
        _res_block_kernel,
        out_shape=jax.ShapeDtypeStruct((N, C, HW), x_nchw.dtype),
        grid_spec=pltpu.PrefetchScalarGridSpec(
            num_scalar_prefetch=0,
            grid=grid,
            in_specs=[
                # x: Nb batch elements, all channels, one spatial tile.
                pl.BlockSpec((Nb, C, tile), lambda n, j: (n, 0, j)),
                # Weights / biases: constant block index -> resident in VMEM.
                pl.BlockSpec((C_mid, C), lambda n, j: (0, 0)),
                pl.BlockSpec((C_mid, 1), lambda n, j: (0, 0)),
                pl.BlockSpec((C, C_mid), lambda n, j: (0, 0)),
                pl.BlockSpec((C, 1), lambda n, j: (0, 0)),
            ],
            out_specs=pl.BlockSpec((Nb, C, tile), lambda n, j: (n, 0, j)),
        ),
        compiler_params=pltpu.CompilerParams(
            dimension_semantics=("parallel", "parallel"),
            # Lift v5e's 16 MiB default scoped limit; actual usage at the default
            # tiling is ~10 MiB, well under physical VMEM on v5e/v6e/v7x.
            vmem_limit_bytes=32 * 1024 * 1024,
        ),
        cost_estimate=cost,
    )(x3, w1, b1c, w2, b2c)

    return out.reshape(N, C, H, W)


def _reference(x, w1, b1, w2, b2):
    # Pure-JAX reference of the PyTorch forward (at matching precision).
    hp = jax.lax.Precision.HIGHEST
    h = jnp.einsum("nchw,mc->nmhw", x, w1, precision=hp) + b1[None, :, None, None]
    h = jnp.maximum(h, 0.0)
    y = jnp.einsum("nmhw,cm->nchw", h, w2, precision=hp) + b2[None, :, None, None]
    return jnp.maximum(y + x, 0.0)


if __name__ == "__main__":
    key = jax.random.PRNGKey(0)
    kx, k1, k2, k3, k4, kx2 = jax.random.split(key, 6)

    # Shapes consistent with the module: input_channel=12 -> mid = 12 // 3 = 4.
    N, C, H, W = 2, 12, 16, 16
    C_mid = C // 3

    x = jax.random.normal(kx, (N, C, H, W), dtype=jnp.float32)
    w1 = jax.random.normal(k1, (C_mid, C), dtype=jnp.float32) * 0.2
    b1 = jax.random.normal(k2, (C_mid,), dtype=jnp.float32) * 0.1
    w2 = jax.random.normal(k3, (C, C_mid), dtype=jnp.float32) * 0.2
    b2 = jax.random.normal(k4, (C,), dtype=jnp.float32) * 0.1

    # --- Path 1: small H*W -> batch-blocked, fully contiguous DMA per step. ---
    out = jax.block_until_ready(spectral_res_block_forward(x, w1, b1, w2, b2))
    ref = _reference(x, w1, b1, w2, b2)
    assert out.shape == (N, C, H, W), out.shape
    err = float(jnp.max(jnp.abs(out - ref)))
    assert jnp.allclose(out, ref, atol=1e-4, rtol=1e-4), f"mismatch, max|diff|={err}"

    # --- Path 2: spatial-tiled path (forced small tile so the test stays small). ---
    x_big = jax.random.normal(kx2, (1, C, 64, 64), dtype=jnp.float32)
    out2 = jax.block_until_ready(
        spectral_res_block_forward(x_big, w1, b1, w2, b2, tile_hw=1024))
    ref2 = _reference(x_big, w1, b1, w2, b2)
    err2 = float(jnp.max(jnp.abs(out2 - ref2)))
    assert jnp.allclose(out2, ref2, atol=1e-4, rtol=1e-4), f"mismatch, max|diff|={err2}"

    print("KERNEL_OK")
</pallas_src>

<mosaic_0001>
module attributes {stable_mosaic.version = 11 : i64} {
  func.func @_res_block_kernel(%arg0: i32, %arg1: i32, %arg2: memref<1x12x256xf32, #tpu.memory_space<vmem>>, %arg3: memref<4x12xf32, #tpu.memory_space<vmem>>, %arg4: memref<4x1xf32, #tpu.memory_space<vmem>>, %arg5: memref<12x4xf32, #tpu.memory_space<vmem>>, %arg6: memref<12x1xf32, #tpu.memory_space<vmem>>, %arg7: memref<1x12x256xf32, #tpu.memory_space<vmem>>) attributes {dimension_semantics = [#tpu.dimension_semantics<parallel>, #tpu.dimension_semantics<parallel>], iteration_bounds = array<i64: 2, 1>, scalar_prefetch = 0 : i64, scratch_operands = 0 : i64, tpu.core_type = #tpu.core_type<tc>, window_params = [{transform_indices = @transform_0, window_bounds = array<i64: 1, 12, 256>}, {pipeline_mode = #tpu.pipeline_mode<synchronous>, transform_indices = @transform_1, window_bounds = array<i64: 4, 12>}, {pipeline_mode = #tpu.pipeline_mode<synchronous>, transform_indices = @transform_2, window_bounds = array<i64: 4, 1>}, {pipeline_mode = #tpu.pipeline_mode<synchronous>, transform_indices = @transform_3, window_bounds = array<i64: 12, 4>}, {pipeline_mode = #tpu.pipeline_mode<synchronous>, transform_indices = @transform_4, window_bounds = array<i64: 12, 1>}, {transform_indices = @transform_5, window_bounds = array<i64: 1, 12, 256>}]} {
    %c0 = arith.constant 0 : index
    %c0_0 = arith.constant 0 : index
    %0 = vector.load %arg3[%c0, %c0_0] : memref<4x12xf32, #tpu.memory_space<vmem>>, vector<4x12xf32>
    %c0_1 = arith.constant 0 : index
    %c0_2 = arith.constant 0 : index
    %1 = vector.load %arg4[%c0_1, %c0_2] : memref<4x1xf32, #tpu.memory_space<vmem>>, vector<4x1xf32>
    %c0_3 = arith.constant 0 : index
    %c0_4 = arith.constant 0 : index
    %2 = vector.load %arg5[%c0_3, %c0_4] : memref<12x4xf32, #tpu.memory_space<vmem>>, vector<12x4xf32>
    %c0_5 = arith.constant 0 : index
    %c0_6 = arith.constant 0 : index
    %3 = vector.load %arg6[%c0_5, %c0_6] : memref<12x1xf32, #tpu.memory_space<vmem>>, vector<12x1xf32>
    %c0_7 = arith.constant 0 : index
    %c0_8 = arith.constant 0 : index
    %c0_9 = arith.constant 0 : index
    %4 = vector.load %arg2[%c0_7, %c0_8, %c0_9] : memref<1x12x256xf32, #tpu.memory_space<vmem>>, vector<1x12x256xf32>
    %5 = vector.shape_cast %4 : vector<1x12x256xf32> to vector<12x256xf32>
    %cst = arith.constant dense<0.000000e+00> : vector<4x256xf32>
    %6 = tpu.matmul %0, %5, %cst {dimension_numbers = #tpu.dot_dimension_numbers<[1], [0], [0], [1], [0, 0, 1, 1], [], []>, precision = #tpu.contract_precision<fp32>} : vector<4x12xf32>, vector<12x256xf32>, vector<4x256xf32> -> vector<4x256xf32>
    %7 = vector.broadcast %1 : vector<4x1xf32> to vector<4x256xf32>
    %8 = arith.addf %6, %7 : vector<4x256xf32>
    %cst_10 = arith.constant 0.000000e+00 : f32
    %9 = vector.broadcast %cst_10 : f32 to vector<4x256xf32>
    %10 = arith.maximumf %8, %9 : vector<4x256xf32>
    %cst_11 = arith.constant dense<0.000000e+00> : vector<12x256xf32>
    %11 = tpu.matmul %2, %10, %cst_11 {dimension_numbers = #tpu.dot_dimension_numbers<[1], [0], [0], [1], [0, 0, 1, 1], [], []>, precision = #tpu.contract_precision<fp32>} : vector<12x4xf32>, vector<4x256xf32>, vector<12x256xf32> -> vector<12x256xf32>
    %12 = vector.broadcast %3 : vector<12x1xf32> to vector<12x256xf32>
    %13 = arith.addf %11, %12 : vector<12x256xf32>
    %14 = arith.addf %13, %5 : vector<12x256xf32>
    %cst_12 = arith.constant 0.000000e+00 : f32
    %15 = vector.broadcast %cst_12 : f32 to vector<12x256xf32>
    %16 = arith.maximumf %14, %15 : vector<12x256xf32>
    %c0_13 = arith.constant 0 : index
    %c0_14 = arith.constant 0 : index
    %c0_15 = arith.constant 0 : index
    %17 = vector.load %arg7[%c0_13, %c0_14, %c0_15] : memref<1x12x256xf32, #tpu.memory_space<vmem>>, vector<1x12x256xf32>
    %18 = vector.shape_cast %17 : vector<1x12x256xf32> to vector<12x256xf32>
    %19 = vector.shape_cast %16 : vector<12x256xf32> to vector<1x12x256xf32>
    tpu.vector_store %arg7[%c0_13, %c0_14, %c0_15], %19 {strides = array<i32>} : memref<1x12x256xf32, #tpu.memory_space<vmem>>, vector<1x12x256xf32>,
    return
  }
  func.func @transform_0(%arg0: i32, %arg1: i32) -> (i32, i32, i32) {
    %c0_i32 = arith.constant 0 : i32
    %c0_i32_0 = arith.constant 0 : i32
    return %arg0, %c0_i32, %arg1 : i32, i32, i32
  }
  func.func @transform_1(%arg0: i32, %arg1: i32) -> (i32, i32) {
    %c0_i32 = arith.constant 0 : i32
    %c0_i32_0 = arith.constant 0 : i32
    %c0_i32_1 = arith.constant 0 : i32
    return %c0_i32, %c0_i32_0 : i32, i32
  }
  func.func @transform_2(%arg0: i32, %arg1: i32) -> (i32, i32) {
    %c0_i32 = arith.constant 0 : i32
    %c0_i32_0 = arith.constant 0 : i32
    %c0_i32_1 = arith.constant 0 : i32
    return %c0_i32, %c0_i32_0 : i32, i32
  }
  func.func @transform_3(%arg0: i32, %arg1: i32) -> (i32, i32) {
    %c0_i32 = arith.constant 0 : i32
    %c0_i32_0 = arith.constant 0 : i32
    %c0_i32_1 = arith.constant 0 : i32
    return %c0_i32, %c0_i32_0 : i32, i32
  }
  func.func @transform_4(%arg0: i32, %arg1: i32) -> (i32, i32) {
    %c0_i32 = arith.constant 0 : i32
    %c0_i32_0 = arith.constant 0 : i32
    %c0_i32_1 = arith.constant 0 : i32
    return %c0_i32, %c0_i32_0 : i32, i32
  }
  func.func @transform_5(%arg0: i32, %arg1: i32) -> (i32, i32, i32) {
    %c0_i32 = arith.constant 0 : i32
    %c0_i32_0 = arith.constant 0 : i32
    return %arg0, %c0_i32, %arg1 : i32, i32, i32
  }
}

</mosaic_0001>

<bundles_post_ra>
// kernel: tpu_custom_call.1
= control target key start
LH: loop header
LB: loop body
LE: loop exit
PB: predicated region body
PF: predicated region fallthrough
CT: control target
= control target key end

     0   :  { %s1516_s18 = smov 0   ;;  %s1518_s19 = smov 0   ;;  %s1632_s0 = inlined_call_operand.vmem [shape: f32[2,12,256], index: 0, kind: input, shape index: {}]   ;;  %s1633_s1 = inlined_call_operand.vmem [shape: f32[4,12], index: 1, kind: input, shape index: {}]   ;;  %s1634_s2 = inlined_call_operand.vmem [shape: f32[4,1], index: 2, kind: input, shape index: {}]   ;;  %s1635_s3 = inlined_call_operand.vmem [shape: f32[12,4], index: 3, kind: input, shape index: {}]   ;;  %s1636_s4 = inlined_call_operand.vmem [shape: f32[12,1], index: 4, kind: input, shape index: {}]   ;;  %s1637_s5 = inlined_call_operand.vmem [shape: f32[2,12,256], index: 5, kind: output, shape index: {}]  }
   0x1   :  { %s1520_s20 = smov 0  }
   0x2 LB: > { %s27_s21 = sadd.s32 1, %s1478_s19  ;;  %p1423_p0 = scmp.ge.s32.totalorder %s1482_s20, 1  ;;  %s1482_s20 = sphi %s1520_s20, %s15_s20   ;;  %s1478_s19 = sphi %s1518_s19, %s1639_s19   ;;  %s1474_s18 = sphi %s1516_s18, %s1638_s18  }
   0x3   : > { %p29_p1 = scmp.ge.s32.totalorder %s27_s21, 2  ;;  %p208_p2 = scmp.lt.s32.totalorder %s1482_s20, 3 }
   0x5   : > { %s1641_s21 = smov (%p29_p1, %s27_s21), 0  ;;  %p209_p3 = pnand %p1423_p0, %p208_p2 }
   0x6   : > { %p245_p4 = scmp.lt.s32.totalorder (!%p209_p3), %s1474_s18, 1 }
   0x7   : > { %212 = sbr.rel (%p209_p3) target bundleno = 474 (0x1da), region = 40 }
   0xc   : > { %v264_v0 = vld [vmem:[%s1633_s1] sm:$0xf]  ;;  %vm279_vm0 = vcmask 97280   ;;  %v1484_v1 = vmov 0.0   ;;  %s1643_s18 = smov (!%p245_p4, %s1474_s18), 1  ;;  %v1485_v5 = vmov 0  }
   0xd   : > { %358 = vmatprep.mubr.f32.mxu0 %v1484_v1  ;;  %v281_v2 = vsel %vm279_vm0, %v264_v0, 0  ;;  %454 = vmatprep.mubr.f32.mxu1 %v1484_v1  ;;  %v265_v3 = vld [vmem:[%s1634_s2] sm:$0xf]  ;;  %s1430_s26 = sshll.u32 %s1643_s18, 5  ;;  %vm283_vm1 = vcmask 1043456   ;;  %vm793_vm2 = vcmask 31744  }
   0xe   : > { %v1544_v4 = vand.u32 4294901760, %v281_v2  ;;  %1458 = vset.pattern.permute.xlu0 %v1485_v5  ;;  %1459 = vset.pattern.permute.xlu1 %v1485_v5  ;;  %v268_v7 = vld [vmem:[%s1636_s4] sm:$0xff]  ;;  %s252_s6 = scalar_lea.vmem %s1632_s0, %s1430_s26  ;;  %v269_v37 = vld [vmem:[%s1636_s4 + $0x8] sm:$0xf]  ;;  %s262_s15 = scalar_lea.vmem %s1637_s5, %s1430_s26 }
   0xf   : > { %276 = vperm.xlu0 %1458, %v265_v3   ;;  %v1556_v8 = vld [vmem:[%s252_s6 + $0x18] sm:$0xf]  ;;  %v1558_v9 = vld [vmem:[%s252_s6 + $0x10] sm:$0xf]  ;;  %v1560_v10 = vld [vmem:[%s252_s6 + $0x8] sm:$0xff]  ;;  %790 = vperm.xlu1 %1459, %v269_v37  }
  0x10   : > { %v360_v6 = vsub.f32 %v281_v2, %v1544_v4  ;;  %v288_v12 = vsel %vm283_vm1, %v1556_v8, 0  ;;  %v285_v13 = vsel %vm283_vm1, %v1558_v9, 0  ;;  %v322_v14 = vand.u32 4294901760, %v1560_v10  ;;  %v1567_v15 = vld [vmem:[%s252_s6] sm:$0xff]  ;;  %v267_v45 = vld [vmem:[%s1635_s3 + $0x8] sm:$0xf] }
  0x11   : > { %v318_v16 = vand.u32 4294901760, %v288_v12  ;;  %v320_v17 = vand.u32 4294901760, %v285_v13  ;;  %v324_v18 = vand.u32 4294901760, %v1567_v15  ;;  %v266_v40 = vld [vmem:[%s1635_s3] sm:$0xff]  ;;  %v798_v52 = vsel %vm793_vm2, %v267_v45, 0 }
  0x12   : > { %v361_v11 = vand.u32 4294901760, %v360_v6  ;;  %v411_v20 = vsub.f32 %v1560_v10, %v322_v14  ;;  %v795_v44 = vsel %vm793_vm2, %v266_v40, 0  ;;  %v1593_v60 = vand.u32 4294901760, %v798_v52 }
  0x13   : > { %785 = vperm.xlu0 %1458, %v268_v7   ;;  %319 = vmatprep.subr.mxu0 %v318_v16  ;;  %v399_v22 = vsub.f32 %v288_v12, %v318_v16  ;;  %v405_v23 = vsub.f32 %v285_v13, %v320_v17  ;;  %v417_v24 = vsub.f32 %v1567_v15, %v324_v18  ;;  %v1590_v50 = vand.u32 4294901760, %v795_v44 }
  0x14   : > { %v362_v19 = vsub.f32 %v360_v6, %v361_v11  ;;  %321 = vmatpush1.msra.mxu0 %v320_v17  ;;  %v412_v25 = vand.u32 4294901760, %v411_v20  ;;  %v885_v5 = vsub.f32 %v798_v52, %v1593_v60 }
  0x15   : > { %323 = vmatprep.subr.mxu0 %v322_v14  ;;  %v400_v26 = vand.u32 4294901760, %v399_v22  ;;  %v406_v27 = vand.u32 4294901760, %v405_v23  ;;  %v418_v28 = vand.u32 4294901760, %v417_v24  ;;  %v874_v59 = vsub.f32 %v795_v44, %v1590_v50 }
  0x16   : > { %v363_v21 = vand.u32 4294901760, %v362_v19  ;;  %325 = vmatpush1.msra.mxu0 %v324_v18  ;;  %v413_v29 = vsub.f32 %v411_v20, %v412_v25 }
  0x17   : > { %v401_v30 = vsub.f32 %v399_v22, %v400_v26  ;;  %492 = vmatprep.subr.mxu0 %v399_v22  ;;  %v407_v31 = vsub.f32 %v405_v23, %v406_v27  ;;  %v419_v32 = vsub.f32 %v417_v24, %v418_v28 }
  0x18   : > { %364 = vmatmul.mubr.f32.vlgmr.msra.gmra.mxu0 %v363_v21  ;;  %v414_v35 = vand.u32 4294901760, %v413_v29 }
  0x19   : > { %495 = vmatpush1.msra.mxu0 %v405_v23  ;;  %534 = vmatprep.mubr.f32.mxu0 %v1484_v1  ;;  %v402_v33 = vand.u32 4294901760, %v401_v30  ;;  %v408_v34 = vand.u32 4294901760, %v407_v31  ;;  %v420_v36 = vand.u32 4294901760, %v419_v32 }
  0x1a   : > { %498 = vmatprep.subr.mxu0 %v411_v20 }
  0x1b   : > { %501 = vmatpush1.msra.mxu0 %v417_v24  ;;  %403 = vmatprep.subr.mxu1 %v402_v33 }
  0x1c   : > { %537 = vmatmul.mubr.f32.vlgmr.msra.gmra.mxu0 %v360_v6  ;;  %409 = vmatpush1.msra.mxu1 %v408_v34 }
  0x1d   : > { %652 = vmatprep.subr.mxu0 %v400_v26  ;;  %415 = vmatprep.subr.mxu1 %v414_v35 }
  0x1e   : > { %656 = vmatpush1.msra.mxu0 %v406_v27  ;;  %421 = vmatpush1.msra.mxu1 %v420_v36 }
  0x1f   : > { %660 = vmatprep.subr.mxu0 %v412_v25  ;;  %456 = vmatmul.mubr.f32.vlgmr.msra.gmra.mxu1 %v1544_v4 }
  0x20   : > { %572 = vmatprep.subr.mxu1 %v318_v16  ;;  %611 = vmatprep.mubr.f32.mxu1 %v1484_v1 }
  0x21   : > { %574 = vmatpush1.msra.mxu1 %v320_v17  ;;  %664 = vmatpush1.msra.mxu0 %v418_v28 }
  0x22   : > { %576 = vmatprep.subr.mxu1 %v322_v14  ;;  %697 = vmatprep.mubr.f32.mxu0 %v1484_v1 }
  0x23   : > { %578 = vmatpush1.msra.mxu1 %v324_v18  ;;  %699 = vmatmul.mubr.f32.vlgmr.msra.gmra.mxu0 %v1544_v4 }
  0x24   : > { %615 = vmatmul.mubr.f32.vlgmr.msra.gmra.mxu1 %v361_v11  ;;  %734 = vmatprep.subr.mxu1 %v318_v16 }
  0x25   : > { %773 = vmatprep.mubr.f32.mxu1 %v1484_v1  ;;  %736 = vmatpush1.msra.mxu1 %v320_v17 }
  0x26   : > { %872 = vmatprep.mubr.f32.mxu0 %v1484_v1  ;;  %738 = vmatprep.subr.mxu1 %v322_v14  ;;  %v886_v14 = vand.u32 4294901760, %v885_v5 }
  0x27   : > { %740 = vmatpush1.msra.mxu1 %v324_v18 }
  0x28   : > { %775 = vmatmul.mubr.f32.vlgmr.msra.gmra.mxu1 %v1544_v4  ;;  %v875_v4 = vand.u32 4294901760, %v874_v59  ;;  %v887_v23 = vsub.f32 %v885_v5, %v886_v14 }
  0x29   : > { %969 = vmatprep.mubr.f32.mxu1 %v1484_v1 }
  0x2a   : > { %v876_v13 = vsub.f32 %v874_v59, %v875_v4  ;;  %v888_v27 = vand.u32 4294901760, %v887_v23 }
  0x2c   : > { %v877_v22 = vand.u32 4294901760, %v876_v13 }
  0x8a   : > { %v277_v41 = vpop.permute.xlu0 %276 }
  0xd8   : > { %v365_v38 = vpop.f32.mrf.mxu0 }
  0xd9   : > { %v366_v43 = vadd.f32 %v365_v38, %v277_v41  ;;  %v786_v38 = vpop.permute.xlu0 %785 }
  0xda   : > { %v367_v39 = vpop.f32.mrf.mxu0 }
  0xdb   : > { %v368_v48 = vadd.f32 %v367_v39, %v277_v41  ;;  %v791_v39 = vpop.permute.xlu1 %790 }
  0xdc   : > { %v538_v42 = vpop.f32.mrf.mxu0 }
  0xde   : > { %v540_v47 = vpop.f32.mrf.mxu0 }
  0xdf   : > { %v457_v46 = vpop.f32.mrf.mxu1 }
  0xe0   : > { %v458_v49 = vadd.f32 %v457_v46, %v366_v43 }
  0xe1   : > { %v459_v51 = vpop.f32.mrf.mxu1 }
  0xe2   : > { %v539_v53 = vadd.f32 %v538_v42, %v458_v49  ;;  %v460_v54 = vadd.f32 %v459_v51, %v368_v48 }
  0xe3   : > { %v700_v56 = vpop.f32.mrf.mxu0 }
  0xe4   : > { %v616_v55 = vpop.f32.mrf.mxu1  ;;  %v541_v57 = vadd.f32 %v540_v47, %v460_v54 }
  0xe5   : > { %v617_v58 = vadd.f32 %v616_v55, %v539_v53  ;;  %v702_v0 = vpop.f32.mrf.mxu0 }
  0xe6   : > { %v618_v61 = vpop.f32.mrf.mxu1 }
  0xe7   : > { %v701_v62 = vadd.f32 %v700_v56, %v617_v58  ;;  %v619_v63 = vadd.f32 %v618_v61, %v541_v57 }
  0xe8   : > { %v776_v3 = vpop.f32.mrf.mxu1 }
  0xe9   : > { %v703_v2 = vadd.f32 %v702_v0, %v619_v63  ;;  %v777_v6 = vadd.f32 %v776_v3, %v701_v62 }
  0xea   : > { %v778_v7 = vpop.f32.mrf.mxu1 }
  0xeb   : > { %v781_v11 = vmax.f32 %v777_v6, 0.0  ;;  %v779_v12 = vadd.f32 %v778_v7, %v703_v2 }
  0xed   : > { %v801_v16 = vsel %vm283_vm1, %v781_v11, 0  ;;  %v782_v17 = vmax.f32 %v779_v12, 0.0 }
  0xee   : > { %v838_v18 = vand.u32 4294901760, %v801_v16 }
  0xef   : > { %v804_v19 = vsel %vm283_vm1, %v782_v17, 0 }
  0xf0   : > { %v932_v20 = vsub.f32 %v801_v16, %v838_v18  ;;  %v836_v21 = vand.u32 4294901760, %v804_v19 }
  0xf2   : > { %v933_v24 = vand.u32 4294901760, %v932_v20  ;;  %837 = vmatprep.subr.mxu0 %v836_v21  ;;  %v926_v25 = vsub.f32 %v804_v19, %v836_v21 }
  0xf3   : > { %839 = vmatpush1.msra.mxu0 %v838_v18 }
  0xf4   : > { %878 = vmatmul.mubr.f32.vlgmr.msra.gmra.mxu0 %v877_v22  ;;  %1016 = vmatprep.subr.mxu0 %v926_v25  ;;  %v927_v26 = vand.u32 4294901760, %v926_v25  ;;  %v934_v28 = vsub.f32 %v932_v20, %v933_v24 }
  0xf5   : > { %1019 = vmatpush1.msra.mxu0 %v932_v20  ;;  %883 = vmatprep.mubr.f32.mxu0 %v1484_v1 }
  0xf6   : > { %1187 = vmatprep.subr.mxu0 %v927_v26  ;;  %v928_v29 = vsub.f32 %v926_v25, %v927_v26  ;;  %v935_v31 = vand.u32 4294901760, %v934_v28 }
  0xf8   : > { %889 = vmatmul.mubr.f32.gmra.mxu0 %v888_v27  ;;  %v929_v30 = vand.u32 4294901760, %v928_v29 }
  0xf9   : > { %1052 = vmatprep.mubr.f32.mxu0 %v1484_v1 }
  0xfa   : > { %930 = vmatprep.subr.mxu1 %v929_v30 }
  0xfb   : > { %936 = vmatpush1.msra.mxu1 %v935_v31 }
  0xfc   : > { %971 = vmatmul.mubr.f32.vlgmr.msra.gmra.mxu1 %v1590_v50  ;;  %1055 = vmatmul.mubr.f32.vlgmr.msra.gmra.mxu0 %v874_v59 }
  0xfd   : > { %1100 = vmatprep.subr.mxu1 %v836_v21  ;;  %1191 = vmatpush1.msra.mxu0 %v933_v24 }
  0xfe   : > { %1102 = vmatpush1.msra.mxu1 %v838_v18  ;;  %976 = vmatprep.mubr.f32.mxu1 %v1484_v1 }
  0xff   : > { %1270 = vmatprep.subr.mxu1 %v836_v21  ;;  %1060 = vmatprep.mubr.f32.mxu0 %v1484_v1 }
 0x100   : > { %978 = vmatmul.mubr.f32.gmra.mxu1 %v1593_v60  ;;  %1063 = vmatmul.mubr.f32.gmra.mxu0 %v885_v5 }
 0x101   : > { %1135 = vmatprep.mubr.f32.mxu1 %v1484_v1  ;;  %1224 = vmatprep.mubr.f32.mxu0 %v1484_v1 }
 0x104   : > { %1139 = vmatmul.mubr.f32.vlgmr.msra.gmra.mxu1 %v875_v4  ;;  %1226 = vmatmul.mubr.f32.vlgmr.msra.gmra.mxu0 %v1590_v50 }
 0x105   : > { %1272 = vmatpush1.msra.mxu1 %v838_v18  ;;  %1144 = vmatprep.mubr.f32.mxu1 %v1484_v1 }
 0x106   : > { %1231 = vmatprep.mubr.f32.mxu0 %v1484_v1 }
 0x108   : > { %1148 = vmatmul.mubr.f32.gmra.mxu1 %v886_v14  ;;  %1233 = vmatmul.mubr.f32.gmra.mxu0 %v1593_v60 }
 0x109   : > { %1305 = vmatprep.mubr.f32.mxu1 %v1484_v1 }
 0x10c   : > { %1307 = vmatmul.mubr.f32.vlgmr.msra.gmra.mxu1 %v1590_v50 }
 0x10d   : > { %1312 = vmatprep.mubr.f32.mxu1 %v1484_v1 }
 0x110   : > { %1314 = vmatmul.mubr.f32.gmra.mxu1 %v1593_v60 }
 0x1b4   : > { %v879_v32 = vpop.f32.mrf.mxu0 }
 0x1b5   : > { %v880_v42 = vadd.f32 %v879_v32, %v786_v38 }
 0x1b6   : > { %v881_v33 = vpop.f32.mrf.mxu0 }
 0x1b7   : > { %v882_v45 = vadd.f32 %v881_v33, %v786_v38 }
 0x1b8   : > { %v890_v34 = vpop.f32.mrf.mxu0 }
 0x1b9   : > { %v891_v47 = vadd.f32 %v890_v34, %v791_v39 }
 0x1ba   : > { %v892_v35 = vpop.f32.mrf.mxu0 }
 0x1bb   : > { %v893_v53 = vadd.f32 %v892_v35, %v791_v39 }
 0x1bc   : > { %v972_v36 = vpop.f32.mrf.mxu1  ;;  %v1056_v37 = vpop.f32.mrf.mxu0 }
 0x1bd   : > { %v973_v46 = vadd.f32 %v972_v36, %v880_v42 }
 0x1be   : > { %v974_v40 = vpop.f32.mrf.mxu1  ;;  %v1058_v41 = vpop.f32.mrf.mxu0 }
 0x1bf   : > { %v975_v49 = vadd.f32 %v974_v40, %v882_v45  ;;  %v1057_v52 = vadd.f32 %v1056_v37, %v973_v46 }
 0x1c0   : > { %v979_v43 = vpop.f32.mrf.mxu1  ;;  %v1064_v44 = vpop.f32.mrf.mxu0 }
 0x1c1   : > { %v980_v54 = vadd.f32 %v979_v43, %v891_v47  ;;  %v1059_v57 = vadd.f32 %v1058_v41, %v975_v49 }
 0x1c2   : > { %v981_v48 = vpop.f32.mrf.mxu1  ;;  %v1066_v1 = vpop.f32.mrf.mxu0 }
 0x1c3   : > { %v982_v58 = vadd.f32 %v981_v48, %v893_v53  ;;  %v1065_v61 = vadd.f32 %v1064_v44, %v980_v54 }
 0x1c4   : > { %v1140_v50 = vpop.f32.mrf.mxu1  ;;  %v1227_v51 = vpop.f32.mrf.mxu0 }
 0x1c5   : > { %v1141_v59 = vadd.f32 %v1140_v50, %v1057_v52  ;;  %v1067_v2 = vadd.f32 %v1066_v1, %v982_v58 }
 0x1c6   : > { %v1142_v55 = vpop.f32.mrf.mxu1  ;;  %v1229_v56 = vpop.f32.mrf.mxu0 }
 0x1c7   : > { %v1143_v62 = vadd.f32 %v1142_v55, %v1059_v57  ;;  %v1228_v3 = vadd.f32 %v1227_v51, %v1141_v59 }
 0x1c8   : > { %v1149_v60 = vpop.f32.mrf.mxu1  ;;  %v1234_v0 = vpop.f32.mrf.mxu0 }
 0x1c9   : > { %v1150_v4 = vadd.f32 %v1149_v60, %v1065_v61  ;;  %v1230_v6 = vadd.f32 %v1229_v56, %v1143_v62 }
 0x1ca   : > { %v1151_v63 = vpop.f32.mrf.mxu1  ;;  %v1236_v12 = vpop.f32.mrf.mxu0 }
 0x1cb   : > { %v1152_v7 = vadd.f32 %v1151_v63, %v1067_v2  ;;  %v1235_v14 = vadd.f32 %v1234_v0, %v1150_v4 }
 0x1cc   : > { %v1308_v5 = vpop.f32.mrf.mxu1 }
 0x1cd   : > { %v1309_v11 = vadd.f32 %v1308_v5, %v1228_v3  ;;  %v1237_v19 = vadd.f32 %v1236_v12, %v1152_v7 }
 0x1ce   : > { %v1310_v13 = vpop.f32.mrf.mxu1 }
 0x1cf   : > { %v1320_v16 = vadd.f32 %v1309_v11, %v1567_v15  ;;  %v1311_v17 = vadd.f32 %v1310_v13, %v1230_v6 }
 0x1d0   : > { %v1315_v18 = vpop.f32.mrf.mxu1 }
 0x1d1   : > { %v1324_v20 = vmax.f32 %v1320_v16, 0.0  ;;  %v1321_v21 = vadd.f32 %v1311_v17, %v1560_v10  ;;  %v1316_v22 = vadd.f32 %v1315_v18, %v1235_v14 }
 0x1d2   : > { %v1317_v23 = vpop.f32.mrf.mxu1 }
 0x1d3   : > { %1328 = vst [vmem:[%s262_s15] sm:$0xff] %v1324_v20  ;;  %v1325_v24 = vmax.f32 %v1321_v21, 0.0  ;;  %v1322_v25 = vadd.f32 %v1316_v22, %v1558_v9  ;;  %v1318_v26 = vadd.f32 %v1317_v23, %v1237_v19 }
 0x1d5   : > { %1329 = vst [vmem:[%s262_s15 + $0x8] sm:$0xff] %v1325_v24  ;;  %v1326_v15 = vmax.f32 %v1322_v25, 0.0  ;;  %v1323_v27 = vadd.f32 %v1318_v26, %v1556_v8 }
 0x1d7   : > { %1330 = vst [vmem:[%s262_s15 + $0x10] sm:$0xf] %v1326_v15  ;;  %v1327_v28 = vmax.f32 %v1323_v27, 0.0 }
 0x1d9   : > { %1331 = vst [vmem:[%s262_s15 + $0x18] sm:$0xf] %v1327_v28 }
 0x1da PF: > { %s15_s20 = sadd.s32 1, %s1482_s20   ;;  %s1638_s18 = smov %s1478_s19 }
 0x1db   : > { %p12_p5 = scmp.ge.s32.totalorder %s15_s20, 4   ;;  %s1639_s19 = smov %s1641_s21 }
 0x1dd   :  { %14 = sbr.rel (!%p12_p5) target bundleno = 2 (0x2), region = 70 }

</bundles_post_ra>
